<compile_context>
chip_gen: v7x
topology: tpu7x:2x2x1
jax: 0.10.0
libtpu: 0.0.40
codegen_flags: <defaults>
</compile_context>

<pallas_src>
import jax
import jax.numpy as jnp
from jax.experimental import pallas as pl
from jax.experimental.pallas import tpu as pltpu

_MIB = 1024 * 1024


def _round_up(a, b):
    return (a + b - 1) // b * b


def _vmem_limit(footprint_bytes):
    # footprint + headroom, clamped so it always fits v7x's 64 MiB/TC while
    # never being the binding constraint on v5e/v6e (tiles stay <~40 MiB).
    return int(min(40 * _MIB, max(32 * _MIB, footprint_bytes + 12 * _MIB)))


# ---------------------------------------------------------------------------
# Fused matmul + bias [+ residual] [+ relu] kernel (1x1 convs, im2col fallback)
# ---------------------------------------------------------------------------
def _matmul_epilogue(acc, b_ref, r_ref, o_ref, relu):
    y = acc + b_ref[...]
    if r_ref is not None:
        y = y + r_ref[...].astype(jnp.float32)   # residual add stays in f32
    if relu:
        y = jnp.maximum(y, 0.0)
    o_ref[...] = y.astype(o_ref.dtype)


def _make_matmul_kernel(relu, has_res, single_k):
    if single_k:
        # Whole K in one block: no scratch accumulator round-trip.
        def kernel(*refs):
            if has_res:
                x_ref, w_ref, b_ref, r_ref, o_ref = refs
            else:
                x_ref, w_ref, b_ref, o_ref = refs
                r_ref = None
            acc = jnp.dot(x_ref[...], w_ref[...],
                          preferred_element_type=jnp.float32)
            _matmul_epilogue(acc, b_ref, r_ref, o_ref, relu)
        return kernel

    def kernel(*refs):
        if has_res:
            x_ref, w_ref, b_ref, r_ref, o_ref, acc_ref = refs
        else:
            x_ref, w_ref, b_ref, o_ref, acc_ref = refs
            r_ref = None
        k = pl.program_id(2)

        @pl.when(k == 0)
        def _():
            acc_ref[...] = jnp.zeros_like(acc_ref)

        acc_ref[...] += jnp.dot(x_ref[...], w_ref[...],
                                preferred_element_type=jnp.float32)

        @pl.when(k == pl.num_programs(2) - 1)
        def _():
            _matmul_epilogue(acc_ref[...], b_ref, r_ref, o_ref, relu)

    return kernel


def _pick_tiles(M, K, N):
    # ---- rows: largest multiple-of-16 divisor of M up to 512 (pad is then a
    # no-op); M<=512 uses a single full-M block.
    if M <= 512:
        tm = M
    else:
        tm = 512
        for cand in range(512, 15, -16):
            if M % cand == 0:
                tm = cand
                break
    Mp = _round_up(M, tm)

    # ---- reduction dim.
    small_m = (Mp == tm) and (M <= 256)
    tk = None
    if small_m and K >= 1024:
        # Weight-DMA-bound tiny-M matmuls (late layers): split K into >=3
        # chunks so Buffered(3) weight streaming hides the HBM fetch.
        for cand in (768, 512, 1024, 384, 256, 128):
            if K % cand == 0 and K // cand >= 3:
                tk = cand
                break
    if tk is None:
        if K <= 2304:
            tk = K                      # single full-K block
        else:
            tk = 256 if K % 256 == 0 else 128
            for cand in range(2304, 255, -256):
                if K % cand == 0:
                    tk = cand
                    break
    Kp = _round_up(K, tk)

    # ---- output channels.
    if N <= 512:
        tn = N
    elif N % 1024 == 0:
        tn = 1024
    else:
        tn = 512
    Np = _round_up(N, tn)
    # keep both v7x TensorCores busy when M fits a single tile
    if Mp // tm == 1 and Np // tn == 1 and tn >= 256 and tn % 256 == 0:
        tn //= 2
        Np = _round_up(N, tn)

    deep_buffer = small_m and (Kp // tk) >= 3
    return tm, tk, tn, Mp, Kp, Np, deep_buffer


def _weight_spec(tk, tn, deep_buffer):
    index_map = lambda i, j, k: (k, j)
    if deep_buffer:
        try:
            return pl.BlockSpec((tk, tn), index_map,
                                pipeline_mode=pl.Buffered(3))
        except Exception:
            pass
    return pl.BlockSpec((tk, tn), index_map)


def matmul_bn(x, w, bias, *, relu, residual=None, out_dtype=jnp.bfloat16):
    """y = (x @ w) + bias [+ residual] [relu].

    BN scale is pre-folded into w's output channels.  x/w/residual feed the
    MXU as bf16; accumulation and the epilogue run in f32; output is bf16."""
    M, K = x.shape
    N = w.shape[1]
    tm, tk, tn, Mp, Kp, Np, deep_buffer = _pick_tiles(M, K, N)
    grid = (Mp // tm, Np // tn, Kp // tk)
    single_k = grid[2] == 1

    xb = x.astype(jnp.bfloat16)
    wb = w.astype(jnp.bfloat16)
    if (Mp, Kp) != (M, K):
        xb = jnp.pad(xb, ((0, Mp - M), (0, Kp - K)))
    if (Kp, Np) != (K, N):
        wb = jnp.pad(wb, ((0, Kp - K), (0, Np - N)))
    bp = bias if Np == N else jnp.pad(bias, ((0, 0), (0, Np - N)))

    in_specs = [
        pl.BlockSpec((tm, tk), lambda i, j, k: (i, k)),
        _weight_spec(tk, tn, deep_buffer),
        pl.BlockSpec((1, tn), lambda i, j, k: (0, j)),
    ]
    args = [xb, wb, bp]
    has_res = residual is not None
    if has_res:
        rb = residual.astype(jnp.bfloat16)
        if (Mp, Np) != (M, N):
            rb = jnp.pad(rb, ((0, Mp - M), (0, Np - N)))
        in_specs.append(pl.BlockSpec((tm, tn), lambda i, j, k: (i, j)))
        args.append(rb)

    # double-buffered bf16 tiles + f32 accumulator scratch footprint
    tile_bytes = (2 * tm * tk * 2
                  + (3 if deep_buffer else 2) * tk * tn * 2
                  + 2 * tm * tn * 2
                  + (2 * tm * tn * 2 if has_res else 0)
                  + 2 * tn * 4)
    if not single_k:
        tile_bytes += tm * tn * 4

    bytes_accessed = 2 * (Mp * Kp + Kp * Np + Mp * Np * (2 if has_res else 1)) + 4 * Np
    cost = pl.CostEstimate(flops=2 * M * K * N, transcendentals=0,
                           bytes_accessed=int(bytes_accessed))

    out = pl.pallas_call(
        _make_matmul_kernel(relu, has_res, single_k),
        out_shape=jax.ShapeDtypeStruct((Mp, Np), out_dtype),
        grid=grid,
        in_specs=in_specs,
        out_specs=pl.BlockSpec((tm, tn), lambda i, j, k: (i, j)),
        scratch_shapes=([] if single_k else [pltpu.VMEM((tm, tn), jnp.float32)]),
        compiler_params=pltpu.CompilerParams(
            dimension_semantics=("parallel", "parallel", "arbitrary"),
            vmem_limit_bytes=_vmem_limit(tile_bytes)),
        cost_estimate=cost,
    )(*args)
    return out[:M, :N]


# ---------------------------------------------------------------------------
# Generic conv via HBM im2col + fused matmul (1x1 convs, 7x7 stem, the three
# stride-2 3x3 convs).  Stride-1 3x3 convs use conv3x3_s1_bn below.
# ---------------------------------------------------------------------------
def conv_bn(x, w, bias, *, stride=1, padding=0, relu=True, residual=None):
    N, H, W, C = x.shape
    kh, kw, _, Cout = w.shape
    Hout = (H + 2 * padding - kh) // stride + 1
    Wout = (W + 2 * padding - kw) // stride + 1

    if kh == 1 and kw == 1 and padding == 0:
        patches = x[:, ::stride, ::stride, :].reshape(N * Hout * Wout, C)
        Kdim = C
    else:
        # TODO(synk): in-kernel patch construction for the stem / stride-2 3x3
        # convs as well (only stride-1 3x3 convs currently avoid HBM im2col).
        xp = jnp.pad(x, ((0, 0), (padding, padding), (padding, padding), (0, 0)))
        cols = []
        for dy in range(kh):
            for dx in range(kw):
                cols.append(xp[:, dy:dy + Hout * stride:stride,
                               dx:dx + Wout * stride:stride, :])
        patches = jnp.concatenate(cols, axis=-1).reshape(N * Hout * Wout, kh * kw * C)
        Kdim = kh * kw * C

    wf = w.reshape(Kdim, Cout)
    res2d = None if residual is None else residual.reshape(N * Hout * Wout, Cout)
    y = matmul_bn(patches, wf, bias, relu=relu, residual=res2d)
    return y.reshape(N, Hout, Wout, Cout)


# ---------------------------------------------------------------------------
# 3x3 / stride-1 / pad-1 conv with in-kernel patch construction.
# The padded image is flattened to (Hp*Wp, C) rows; tap (dy,dx) of flat output
# pixel m is row m + dy*Wp + dx, so each tap is one contiguous row-window of
# the flat input feeding an accumulating MXU matmul.  Two garbage columns per
# output row are over-computed and sliced off by the wrapper.
# ---------------------------------------------------------------------------
def _make_conv3x3_kernel(Wp, C, relu):
    def kernel(x_ref, w_ref, b_ref, o_ref):
        # x_ref: (Lin, C), w_ref: (9*C, tn), b_ref: (1, tn), o_ref: (Mo, tn)
        Mo, tn = o_ref.shape
        acc = jnp.zeros((Mo, tn), jnp.float32)
        for dy in range(3):
            for dx in range(3):
                t = dy * 3 + dx
                lhs = x_ref[pl.ds(dy * Wp + dx, Mo), :]
                rhs = w_ref[pl.ds(t * C, C), :]
                acc = acc + jnp.dot(lhs, rhs, preferred_element_type=jnp.float32)
        y = acc + b_ref[...]
        if relu:
            y = jnp.maximum(y, 0.0)
        o_ref[...] = y.astype(o_ref.dtype)
    return kernel


def conv3x3_s1_bn(x, w, bias, *, relu=True):
    N, H, W, C = x.shape
    Cout = w.shape[3]
    Wp = W + 2
    # rows padded (1 top, 2 bottom): the extra bottom row covers the flat
    # over-read caused by the two garbage columns of the last output row.
    xp = jnp.pad(x, ((0, 0), (1, 2), (1, 1), (0, 0)))
    Lin = (H + 3) * Wp
    xf = xp.reshape(N, Lin, C)
    Mo = H * Wp
    wf = w.reshape(9 * C, Cout).astype(jnp.bfloat16)

    tn = Cout if Cout <= 512 else 512
    assert Cout % tn == 0
    grid = (Cout // tn, N)      # j outer so the weight block is fetched once

    footprint = (2 * Lin * C * 2 + 2 * 9 * C * tn * 2 + 2 * Mo * tn * 2
                 + Mo * tn * 4 + Mo * C * 2 + 2 * tn * 4)
    cost = pl.CostEstimate(
        flops=2 * N * Mo * 9 * C * Cout, transcendentals=0,
        bytes_accessed=int(2 * N * (Lin * C + Mo * Cout) + 2 * 9 * C * Cout + 4 * Cout))

    out = pl.pallas_call(
        _make_conv3x3_kernel(Wp, C, relu),
        out_shape=jax.ShapeDtypeStruct((N, Mo, Cout), jnp.bfloat16),
        grid=grid,
        in_specs=[
            pl.BlockSpec((None, Lin, C), lambda j, n: (n, 0, 0)),
            pl.BlockSpec((9 * C, tn), lambda j, n: (0, j)),
            pl.BlockSpec((1, tn), lambda j, n: (0, j)),
        ],
        out_specs=pl.BlockSpec((None, Mo, tn), lambda j, n: (n, 0, j)),
        compiler_params=pltpu.CompilerParams(
            dimension_semantics=("parallel", "parallel"),
            vmem_limit_bytes=_vmem_limit(footprint)),
        cost_estimate=cost,
    )(xf, wf, bias)
    # (N, H*Wp, Cout) -> (N, H, Wp, Cout) -> drop the 2 over-computed columns.
    return out.reshape(N, H, Wp, Cout)[:, :, :W, :]


# ---------------------------------------------------------------------------
# MaxPool 3x3 / stride 2 / pad 1: the 9 window taps are shifted row-windows of
# the flattened padded image taken in-kernel; a dense stride-1 result is
# written and the stride-2 subsample is a cheap wrapper slice.
# ---------------------------------------------------------------------------
def _make_maxpool_kernel(Wp):
    def kernel(x_ref, o_ref):
        Mo = o_ref.shape[0]
        y = x_ref[pl.ds(0, Mo), :]
        for dy in range(3):
            for dx in range(3):
                if dy == 0 and dx == 0:
                    continue
                y = jnp.maximum(y, x_ref[pl.ds(dy * Wp + dx, Mo), :])
        o_ref[...] = y
    return kernel


def maxpool_3x3_s2(x):
    # TODO(synk): in-kernel stride-2 subsampling (strided pl.ds reads) to cut
    # the dense writeback; C=64 blocks are also only half lane-dense.
    N, H, W, C = x.shape
    Hout = (H - 1) // 2 + 1
    Wout = (W - 1) // 2 + 1
    Wp = W + 2
    xp = jnp.pad(x, ((0, 0), (1, 2), (1, 1), (0, 0)),
                 constant_values=float("-inf"))
    Lin = (H + 3) * Wp
    xf = xp.reshape(N, Lin, C)
    Mo = H * Wp

    footprint = 2 * Lin * C * 2 + 2 * Mo * C * 2 + Mo * C * 2
    out = pl.pallas_call(
        _make_maxpool_kernel(Wp),
        out_shape=jax.ShapeDtypeStruct((N, Mo, C), x.dtype),
        grid=(N,),
        in_specs=[pl.BlockSpec((None, Lin, C), lambda n: (n, 0, 0))],
        out_specs=pl.BlockSpec((None, Mo, C), lambda n: (n, 0, 0)),
        compiler_params=pltpu.CompilerParams(
            dimension_semantics=("parallel",),
            vmem_limit_bytes=_vmem_limit(footprint)),
    )(xf)
    out = out.reshape(N, H, Wp, C)
    return out[:, 0:2 * Hout:2, 0:2 * Wout:2, :]


# ---------------------------------------------------------------------------
# Global average pool (adaptive avgpool to 1x1 + flatten) as Pallas reduction
# ---------------------------------------------------------------------------
def _avgpool_kernel(x_ref, o_ref):
    o_ref[...] = jnp.mean(x_ref[...].astype(jnp.float32), axis=1)


def global_avgpool(x):
    N, H, W, C = x.shape
    xr = x.reshape(N, H * W, C)
    tc = min(C, 512)
    assert C % tc == 0
    return pl.pallas_call(
        _avgpool_kernel,
        out_shape=jax.ShapeDtypeStruct((N, C), jnp.float32),
        grid=(C // tc,),
        in_specs=[pl.BlockSpec((N, H * W, tc), lambda j: (0, 0, j))],
        out_specs=pl.BlockSpec((N, tc), lambda j: (0, j)),
        compiler_params=pltpu.CompilerParams(
            dimension_semantics=("parallel",)),
    )(xr)


# ---------------------------------------------------------------------------
# Deterministic parameter construction (synthetic; BN folded into weights/bias)
# ---------------------------------------------------------------------------
def _conv_bn_params(key, kh, kw, cin, cout):
    kw_, kg, kb = jax.random.split(key, 3)
    fan_in = kh * kw * cin
    w = jax.random.normal(kw_, (kh, kw, cin, cout), jnp.float32) * jnp.sqrt(2.0 / fan_in)
    gamma = jax.random.uniform(kg, (1, cout), jnp.float32, 0.8, 1.2)
    beta = jax.random.normal(kb, (1, cout), jnp.float32) * 0.05
    running_mean = jnp.zeros((1, cout), jnp.float32)
    running_var = jnp.ones((1, cout), jnp.float32)
    eps = 1e-5
    scale = gamma / jnp.sqrt(running_var + eps)
    bias = beta - running_mean * scale
    # Fold BN scale into the conv weights at parameter-build time so the
    # kernel epilogue is only +bias [+residual] [relu].
    w_folded = (w * scale.reshape(1, 1, 1, cout)).astype(jnp.bfloat16)
    return (w_folded, bias)


def init_resnet50(key):
    keys = iter(jax.random.split(key, 64))
    params = {"stem": _conv_bn_params(next(keys), 7, 7, 3, 64)}
    cfg = [(64, 3, 1), (128, 4, 2), (256, 6, 2), (512, 3, 2)]  # bottleneck layers
    inplanes = 64
    layers = []
    for planes, nblocks, stride in cfg:
        blocks = []
        for b in range(nblocks):
            s = stride if b == 0 else 1
            blk = {
                "stride": s,
                "conv1": _conv_bn_params(next(keys), 1, 1, inplanes, planes),
                "conv2": _conv_bn_params(next(keys), 3, 3, planes, planes),
                "conv3": _conv_bn_params(next(keys), 1, 1, planes, planes * 4),
                "down": (_conv_bn_params(next(keys), 1, 1, inplanes, planes * 4)
                         if (s != 1 or inplanes != planes * 4) else None),
            }
            blocks.append(blk)
            inplanes = planes * 4
        layers.append(blocks)
    params["layers"] = layers
    return params


# ---------------------------------------------------------------------------
# ResNet50 forward (stem -> layer1..4 -> global avgpool -> (B, 2048) features)
# fc is intentionally absent (checkpoint strips 'fc', out_features == 2048).
# ---------------------------------------------------------------------------
def resnet50_forward(params, x_nchw):
    # NCHW -> NHWC; activations kept in bf16 throughout the backbone.
    x = jnp.transpose(x_nchw, (0, 2, 3, 1)).astype(jnp.bfloat16)

    w, b = params["stem"]
    x = conv_bn(x, w, b, stride=2, padding=3, relu=True)
    x = maxpool_3x3_s2(x)

    for layer in params["layers"]:
        for blk in layer:
            identity = x
            w1, b1 = blk["conv1"]
            w2, b2 = blk["conv2"]
            w3, b3 = blk["conv3"]
            out = conv_bn(x, w1, b1, stride=1, padding=0, relu=True)
            if blk["stride"] == 1:
                out = conv3x3_s1_bn(out, w2, b2, relu=True)     # in-kernel taps
            else:
                out = conv_bn(out, w2, b2, stride=blk["stride"], padding=1,
                              relu=True)                        # im2col fallback
            if blk["down"] is not None:
                wd, bd = blk["down"]
                identity = conv_bn(x, wd, bd, stride=blk["stride"],
                                   padding=0, relu=False)
            # conv3 + bias + residual add (f32) + relu fused in one Pallas kernel
            out = conv_bn(out, w3, b3, stride=1, padding=0, relu=True,
                          residual=identity)
            x = out

    return global_avgpool(x)  # (B, 2048) float32


if __name__ == "__main__":
    key = jax.random.PRNGKey(0)
    pkey, xkey = jax.random.split(key)
    params = init_resnet50(pkey)

    # NCHW input, as the PyTorch module expects (3 input channels required).
    x = jax.random.normal(xkey, (2, 3, 64, 64), jnp.float32)

    feat = resnet50_forward(params, x)
    feat = jax.block_until_ready(feat)

    assert feat.shape == (2, 2048), feat.shape
    assert bool(jnp.all(jnp.isfinite(feat)))
    print("KERNEL_OK")
</pallas_src>

<mosaic_0001>
module attributes {stable_mosaic.version = 11 : i64} {
  func.func @kernel(%arg0: i32, %arg1: i32, %arg2: i32, %arg3: memref<512x147xbf16, #tpu.memory_space<vmem>>, %arg4: memref<147x64xbf16, #tpu.memory_space<vmem>>, %arg5: memref<1x64xf32, #tpu.memory_space<vmem>>, %arg6: memref<512x64xbf16, #tpu.memory_space<vmem>>) attributes {dimension_semantics = [#tpu.dimension_semantics<parallel>, #tpu.dimension_semantics<parallel>, #tpu.dimension_semantics<arbitrary>], iteration_bounds = array<i64: 4, 1, 1>, scalar_prefetch = 0 : i64, scratch_operands = 0 : i64, tpu.core_type = #tpu.core_type<tc>, window_params = [{transform_indices = @transform_0, window_bounds = array<i64: 512, 147>}, {transform_indices = @transform_1, window_bounds = array<i64: 147, 64>}, {transform_indices = @transform_2, window_bounds = array<i64: 1, 64>}, {transform_indices = @transform_3, window_bounds = array<i64: 512, 64>}]} {
    %c0 = arith.constant 0 : index
    %c0_0 = arith.constant 0 : index
    %0 = vector.load %arg3[%c0, %c0_0] : memref<512x147xbf16, #tpu.memory_space<vmem>>, vector<512x147xbf16>
    %c0_1 = arith.constant 0 : index
    %c0_2 = arith.constant 0 : index
    %1 = vector.load %arg4[%c0_1, %c0_2] : memref<147x64xbf16, #tpu.memory_space<vmem>>, vector<147x64xbf16>
    %cst = arith.constant dense<0.000000e+00> : vector<512x64xf32>
    %2 = tpu.matmul %0, %1, %cst {dimension_numbers = #tpu.dot_dimension_numbers<[1], [0], [0], [1], [0, 0, 1, 1], [], []>} : vector<512x147xbf16>, vector<147x64xbf16>, vector<512x64xf32> -> vector<512x64xf32>
    %c0_3 = arith.constant 0 : index
    %c0_4 = arith.constant 0 : index
    %3 = vector.load %arg5[%c0_3, %c0_4] : memref<1x64xf32, #tpu.memory_space<vmem>>, vector<1x64xf32>
    %4 = vector.broadcast %3 : vector<1x64xf32> to vector<512x64xf32>
    %5 = arith.addf %2, %4 : vector<512x64xf32>
    %cst_5 = arith.constant 0.000000e+00 : f32
    %6 = vector.broadcast %cst_5 : f32 to vector<512x64xf32>
    %7 = arith.maximumf %5, %6 : vector<512x64xf32>
    %8 = arith.truncf %7 : vector<512x64xf32> to vector<512x64xbf16>
    %c0_6 = arith.constant 0 : index
    %c0_7 = arith.constant 0 : index
    %9 = vector.load %arg6[%c0_6, %c0_7] : memref<512x64xbf16, #tpu.memory_space<vmem>>, vector<512x64xbf16>
    tpu.vector_store %arg6[%c0_6, %c0_7], %8 {strides = array<i32>} : memref<512x64xbf16, #tpu.memory_space<vmem>>, vector<512x64xbf16>,
    return
  }
  func.func @transform_0(%arg0: i32, %arg1: i32, %arg2: i32) -> (i32, i32) {
    %c0_i32 = arith.constant 0 : i32
    return %arg0, %arg2 : i32, i32
  }
  func.func @transform_1(%arg0: i32, %arg1: i32, %arg2: i32) -> (i32, i32) {
    %c0_i32 = arith.constant 0 : i32
    return %arg2, %arg1 : i32, i32
  }
  func.func @transform_2(%arg0: i32, %arg1: i32, %arg2: i32) -> (i32, i32) {
    %c0_i32 = arith.constant 0 : i32
    %c0_i32_0 = arith.constant 0 : i32
    return %c0_i32, %arg1 : i32, i32
  }
  func.func @transform_3(%arg0: i32, %arg1: i32, %arg2: i32) -> (i32, i32) {
    %c0_i32 = arith.constant 0 : i32
    return %arg0, %arg1 : i32, i32
  }
}

</mosaic_0001>

<bundles_post_ra>
// kernel: tpu_custom_call.1
= control target key start
LH: loop header
LB: loop body
LE: loop exit
PB: predicated region body
PF: predicated region fallthrough
CT: control target
= control target key end

     0   :  { %s2043_s12 = smov 0   ;;  %s2045_s13 = smov 0   ;;  %s2407_s0 = inlined_call_operand.vmem [shape: bf16[2048,147], index: 0, kind: input, shape index: {}]   ;;  %s2408_s1 = inlined_call_operand.vmem [shape: bf16[147,64], index: 1, kind: input, shape index: {}]   ;;  %s2409_s2 = inlined_call_operand.vmem [shape: f32[1,64], index: 2, kind: input, shape index: {}]   ;;  %s2410_s3 = inlined_call_operand.vmem [shape: bf16[2048,64], index: 3, kind: output, shape index: {}]  }
   0x1   :  { %s2047_s14 = smov 0  }
   0x2 LB: > { %s32_s15 = sadd.s32 1, %s2015_s13  ;;  %p1601_p0 = scmp.ge.s32.totalorder %s2019_s14, 1  ;;  %s2019_s14 = sphi %s2047_s14, %s13_s14   ;;  %s2015_s13 = sphi %s2045_s13, %s2412_s13   ;;  %s2011_s12 = sphi %s2043_s12, %s2411_s12  }
   0x3   : > { %p34_p1 = scmp.ge.s32.totalorder %s32_s15, 4  ;;  %p191_p2 = scmp.lt.s32.totalorder %s2019_s14, 5 }
   0x5   : > { %s2414_s15 = smov (%p34_p1, %s32_s15), 0  ;;  %p192_p3 = pnand %p1601_p0, %p191_p2 }
   0x6   : > { %v1891_v0 = vld [vmem:[%s2408_s1] sm:$0xff] (!%p192_p3)   ;;  %v2021_v1 = vmov (!%p192_p3), 0   ;;  %v1892_v2 = vld [vmem:[%s2408_s1 + $0x8] sm:$0xff] (!%p192_p3)   ;;  %v1893_v3 = vld [vmem:[%s2408_s1 + $0x10] sm:$0xff] (!%p192_p3)   ;;  %s1602_s22 = sshll.u32 (!%p192_p3), %s2011_s12, 6  ;;  %vm703_vm0 = vcmask (!%p192_p3), 154624  }
   0x7   : > { %195 = sbr.rel (%p192_p3) target bundleno = 388 (0x184), region = 32  ;;  %807 = vmatprep.subr.bf16.mxu0 (!%p192_p3), %v2021_v1  ;;  %1845 = vmatprep.subr.bf16.mxu1 (!%p192_p3), %v2021_v1  ;;  %p236_p4 = scmp.lt.s32.totalorder (!%p192_p3), %s1602_s22, 255  ;;  %v1894_v4 = vld [vmem:[%s2408_s1 + $0x18] sm:$0xff] (!%p192_p3)   ;;  %v1895_v5 = vld [vmem:[%s2408_s1 + $0x20] sm:$0xff] (!%p192_p3)   ;;  %v1896_v8 = vld [vmem:[%s2408_s1 + $0x28] sm:$0xff] (!%p192_p3)   ;;  %vm800_vm1 = vcmask (!%p192_p3), 1040384  }
   0x8   : > { %808 = vmatpush1.bf16.msra.mxu0 (!%p192_p3), %v1891_v0  ;;  %1855 = vmatpush1.bf16.msra.mxu1 (!%p192_p3), %v1891_v0  ;;  %v1897_v9 = vld [vmem:[%s2408_s1 + $0x30] sm:$0xff] (!%p192_p3)   ;;  %v1898_v10 = vld [vmem:[%s2408_s1 + $0x38] sm:$0xff] (!%p192_p3)   ;;  %vm801_vm2 = vcmask (!%p192_p3), 1041408   ;;  %v2022_v11 = vmov (!%p192_p3), 65535   ;;  %v1899_v13 = vld [vmem:[%s2408_s1 + $0x40] sm:$0xff] (!%p192_p3)   ;;  %vm1416_vm3 = vcmask (!%p192_p3), 519168  }
   0x9   : > { %809 = vmatprep.subr.bf16.mxu0 (!%p192_p3), %v2021_v1  ;;  %1846 = vmatprep.subr.bf16.mxu1 (!%p192_p3), %v2021_v1  ;;  %v802_v12 = vsel (!%p192_p3), %vm800_vm1, 4294967295, %v2022_v11  ;;  %v1900_v14 = vld [vmem:[%s2408_s1 + $0x48] ss:$0 sps:$4 sm:$0x33] (!%p192_p3)  }
   0xa   : > { %v803_v15 = vsel (!%p192_p3), %vm801_vm2, %v802_v12, 0 }
   0xb   : > { %v805_v16 = vand.u32 (!%p192_p3), %v1900_v14, %v803_v15  ;;  %v2198_v15 = vld [vmem:[%s2409_s2] ss:$0 sm:$0xff] (!%p192_p3) }
   0xc   : > { %810 = vmatpush1.bf16.msra.mxu0 (!%p192_p3), %v1892_v2  ;;  %1856 = vmatpush1.bf16.msra.mxu1 (!%p192_p3), %v1892_v2 }
   0xd   : > { %811 = vmatprep.subr.bf16.mxu0 (!%p192_p3), %v2021_v1  ;;  %1847 = vmatprep.subr.bf16.mxu1 (!%p192_p3), %v2021_v1 }
   0xe   : > { %s2416_s22 = smov (!%p236_p4, %s1602_s22), 255 }
   0xf   : > { %s1780_s25 = sshll.u32 %s2416_s22, 3  ;;  %s1606_s19 = sshll.u32 %s2416_s22, 2 }
  0x10   : > { %812 = vmatpush1.bf16.msra.mxu0 %v1893_v3  ;;  %1857 = vmatpush1.bf16.msra.mxu1 %v1893_v3  ;;  %s2079_s28 = scalar_lea.vmem %s2407_s0, %s1780_s25  ;;  %s2208_s22 = scalar_lea.vmem %s2410_s3, %s1606_s19 }
  0x11   : > { %813 = vmatprep.subr.bf16.mxu0 %v2021_v1  ;;  %1848 = vmatprep.subr.bf16.mxu1 %v2021_v1  ;;  %v1903_v6 = vld [vmem:[%s2079_s28 + $0x4] ss:$8 sps:$4 sm:$0xff]   ;;  %v1901_v17 = vld [vmem:[%s2079_s28] ss:$8 sps:$4 sm:$0xff]   ;;  %v1907_v19 = vld [vmem:[%s2079_s28 + $0x14] ss:$8 sps:$4 sm:$0xff]  }
  0x12   : > { %v1906_v7 = vld [vmem:[%s2079_s28 + $0x104] ss:$8 sps:$4 sm:$0xff]   ;;  %1682 = vmatprep.mubr.msk.bf16.mxu0 %vm703_vm0, %v1903_v6  ;;  %v1904_v18 = vld [vmem:[%s2079_s28 + $0x100] ss:$8 sps:$4 sm:$0xff]   ;;  %v1909_v20 = vld [vmem:[%s2079_s28 + $0x114] ss:$8 sps:$4 sm:$0xff]  }
  0x13   : > { %1698 = vmatprep.mubr.msk.bf16.mxu1 %vm703_vm0, %v1906_v7  ;;  %v1911_v21 = vld [vmem:[%s2079_s28 + $0x10] ss:$8 sps:$4 sm:$0xff]   ;;  %v1913_v23 = vld [vmem:[%s2079_s28 + $0x24] ss:$8 sps:$4 sm:$0xff]   ;;  %v1917_v25 = vld [vmem:[%s2079_s28 + $0x20] ss:$8 sps:$4 sm:$0xff]  }
  0x14   : > { %814 = vmatpush1.bf16.msra.mxu0 %v1894_v4  ;;  %1858 = vmatpush1.bf16.msra.mxu1 %v1894_v4  ;;  %v1912_v22 = vld [vmem:[%s2079_s28 + $0x110] ss:$8 sps:$4 sm:$0xff]   ;;  %v1915_v24 = vld [vmem:[%s2079_s28 + $0x124] ss:$8 sps:$4 sm:$0xff]   ;;  %v1918_v26 = vld [vmem:[%s2079_s28 + $0x120] ss:$8 sps:$4 sm:$0xff]  }
  0x15   : > { %815 = vmatprep.subr.bf16.mxu0 %v2021_v1  ;;  %1849 = vmatprep.subr.bf16.mxu1 %v2021_v1  ;;  %v1919_v27 = vld [vmem:[%s2079_s28 + $0x34] ss:$8 sps:$4 sm:$0xff]   ;;  %v1923_v29 = vld [vmem:[%s2079_s28 + $0x30] ss:$8 sps:$4 sm:$0xff]   ;;  %v1925_v31 = vld [vmem:[%s2079_s28 + $0x44] ss:$8 sps:$4 sm:$0xff]  }
  0x16   : > { %v1921_v28 = vld [vmem:[%s2079_s28 + $0x134] ss:$8 sps:$4 sm:$0xff]   ;;  %v1924_v30 = vld [vmem:[%s2079_s28 + $0x130] ss:$8 sps:$4 sm:$0xff]   ;;  %v1927_v32 = vld [vmem:[%s2079_s28 + $0x144] ss:$8 sps:$4 sm:$0xff]  }
  0x17   : > { %v1929_v33 = vld [vmem:[%s2079_s28 + $0x40] ss:$8 sps:$4 sm:$0xff]   ;;  %v1931_v35 = vld [vmem:[%s2079_s28 + $0x54] ss:$8 sps:$4 sm:$0xff]   ;;  %v1935_v37 = vld [vmem:[%s2079_s28 + $0x50] ss:$8 sps:$4 sm:$0xff]  }
  0x18   : > { %816 = vmatpush1.bf16.msra.mxu0 %v1895_v5  ;;  %1859 = vmatpush1.bf16.msra.mxu1 %v1895_v5  ;;  %v1930_v34 = vld [vmem:[%s2079_s28 + $0x140] ss:$8 sps:$4 sm:$0xff]   ;;  %v1933_v36 = vld [vmem:[%s2079_s28 + $0x154] ss:$8 sps:$4 sm:$0xff]   ;;  %v1936_v38 = vld [vmem:[%s2079_s28 + $0x150] ss:$8 sps:$4 sm:$0xff]  }
  0x19   : > { %817 = vmatprep.subr.bf16.mxu0 %v2021_v1  ;;  %1850 = vmatprep.subr.bf16.mxu1 %v2021_v1  ;;  %v1937_v39 = vld [vmem:[%s2079_s28 + $0x64] ss:$8 sps:$4 sm:$0xff]   ;;  %v1941_v41 = vld [vmem:[%s2079_s28 + $0x60] ss:$8 sps:$4 sm:$0xff]   ;;  %v1943_v43 = vld [vmem:[%s2079_s28 + $0x74] ss:$8 sps:$4 sm:$0xff]  }
  0x1a   : > { %v1939_v40 = vld [vmem:[%s2079_s28 + $0x164] ss:$8 sps:$4 sm:$0xff]   ;;  %v1942_v42 = vld [vmem:[%s2079_s28 + $0x160] ss:$8 sps:$4 sm:$0xff]   ;;  %v1945_v44 = vld [vmem:[%s2079_s28 + $0x174] ss:$8 sps:$4 sm:$0xff]  }
  0x1b   : > { %v1947_v45 = vld [vmem:[%s2079_s28 + $0x70] ss:$8 sps:$4 sm:$0xff]   ;;  %v1949_v47 = vld [vmem:[%s2079_s28 + $0x84] ss:$8 sps:$4 sm:$0xff]   ;;  %v1953_v49 = vld [vmem:[%s2079_s28 + $0x80] ss:$8 sps:$4 sm:$0xff]  }
  0x1c   : > { %818 = vmatpush1.bf16.msra.mxu0 %v1896_v8  ;;  %1860 = vmatpush1.bf16.msra.mxu1 %v1896_v8  ;;  %v1948_v46 = vld [vmem:[%s2079_s28 + $0x170] ss:$8 sps:$4 sm:$0xff]   ;;  %v1951_v48 = vld [vmem:[%s2079_s28 + $0x184] ss:$8 sps:$4 sm:$0xff]   ;;  %v1954_v50 = vld [vmem:[%s2079_s28 + $0x180] ss:$8 sps:$4 sm:$0xff]  }
  0x1d   : > { %819 = vmatprep.subr.bf16.mxu0 %v2021_v1  ;;  %1851 = vmatprep.subr.bf16.mxu1 %v2021_v1  ;;  %v1955_v51 = vld [vmem:[%s2079_s28 + $0x94] ss:$8 sps:$4 sm:$0xff]   ;;  %v1959_v53 = vld [vmem:[%s2079_s28 + $0x90] ss:$8 sps:$4 sm:$0xff]   ;;  %v1961_v55 = vld [vmem:[%s2079_s28 + $0xa4] ss:$8 sps:$4 sm:$0xff]  }
  0x1e   : > { %v1957_v52 = vld [vmem:[%s2079_s28 + $0x194] ss:$8 sps:$4 sm:$0xff]   ;;  %v1960_v54 = vld [vmem:[%s2079_s28 + $0x190] ss:$8 sps:$4 sm:$0xff]   ;;  %v1963_v56 = vld [vmem:[%s2079_s28 + $0x1a4] ss:$8 sps:$4 sm:$0xff]  }
  0x1f   : > { %v1965_v57 = vld [vmem:[%s2079_s28 + $0xa0] ss:$8 sps:$4 sm:$0xff]   ;;  %v1967_v59 = vld [vmem:[%s2079_s28 + $0xb4] ss:$8 sps:$4 sm:$0xff]   ;;  %v1971_v61 = vld [vmem:[%s2079_s28 + $0xb0] ss:$8 sps:$4 sm:$0xff]  }
  0x20   : > { %820 = vmatpush1.bf16.msra.mxu0 %v1897_v9  ;;  %1861 = vmatpush1.bf16.msra.mxu1 %v1897_v9  ;;  %v1966_v58 = vld [vmem:[%s2079_s28 + $0x1a0] ss:$8 sps:$4 sm:$0xff]   ;;  %v1969_v60 = vld [vmem:[%s2079_s28 + $0x1b4] ss:$8 sps:$4 sm:$0xff]   ;;  %v1972_v62 = vld [vmem:[%s2079_s28 + $0x1b0] ss:$8 sps:$4 sm:$0xff]  }
  0x21   : > { %821 = vmatprep.subr.bf16.mxu0 %v2021_v1  ;;  %1852 = vmatprep.subr.bf16.mxu1 %v2021_v1  ;;  %v1973_v63 = vld [vmem:[%s2079_s28 + $0xc4] ss:$8 sps:$4 sm:$0xff]   ;;  %v1978_v2 = vld [vmem:[%s2079_s28 + $0x1c0] ss:$8 sps:$4 sm:$0xff]   ;;  %v1979_v3 = vld [vmem:[%s2079_s28 + $0xd4] ss:$8 sps:$4 sm:$0xff]  }
  0x22   : > { %v1975_v0 = vld [vmem:[%s2079_s28 + $0x1c4] ss:$8 sps:$4 sm:$0xff]   ;;  %v1981_v4 = vld [vmem:[%s2079_s28 + $0x1d4] ss:$8 sps:$4 sm:$0xff]   ;;  %v1983_v5 = vld [vmem:[%s2079_s28 + $0xd0] ss:$8 sps:$4 sm:$0xff]  }
  0x23   : > { %v1984_v6 = vld [vmem:[%s2079_s28 + $0x1d0] ss:$8 sps:$4 sm:$0xff]   ;;  %v1985_v7 = vld [vmem:[%s2079_s28 + $0xe4] ss:$8 sps:$4 sm:$0xff]   ;;  %v1989_v9 = vld [vmem:[%s2079_s28 + $0xe0] ss:$8 sps:$4 sm:$0xff]  }
  0x24   : > { %822 = vmatpush1.bf16.msra.mxu0 %v1898_v10  ;;  %1862 = vmatpush1.bf16.msra.mxu1 %v1898_v10  ;;  %v1987_v8 = vld [vmem:[%s2079_s28 + $0x1e4] ss:$8 sps:$4 sm:$0xff]   ;;  %v1990_v10 = vld [vmem:[%s2079_s28 + $0x1e0] ss:$8 sps:$4 sm:$0xff]   ;;  %v1991_v11 = vld [vmem:[%s2079_s28 + $0xf4] ss:$8 sps:$4 sm:$0xff]  }
  0x25   : > { %823 = vmatprep.subr.bf16.mxu0 %v2021_v1  ;;  %1853 = vmatprep.subr.bf16.mxu1 %v2021_v1  ;;  %v1993_v12 = vld [vmem:[%s2079_s28 + $0x1f4] ss:$8 sps:$4 sm:$0xff]   ;;  %v1996_v14 = vld [vmem:[%s2079_s28 + $0x1f0] ss:$8 sps:$4 sm:$0xff]  }
  0x28   : > { %824 = vmatpush1.bf16.msra.mxu0 %v1899_v13  ;;  %1863 = vmatpush1.bf16.msra.mxu1 %v1899_v13  ;;  %v1995_v13 = vld [vmem:[%s2079_s28 + $0xf0] ss:$8 sps:$4 sm:$0xff]  }
  0x29   : > { %825 = vmatprep.subr.bf16.mxu0 %v2021_v1  ;;  %1854 = vmatprep.subr.bf16.mxu1 %v2021_v1  ;;  %v1977_v1 = vld [vmem:[%s2079_s28 + $0xc0] ss:$8 sps:$4 sm:$0xff]  }
  0x2c   : > { %826 = vmatpush1.bf16.msra.mxu0 %v805_v16  ;;  %1864 = vmatpush1.bf16.msra.mxu1 %v805_v16 }
  0x2f   : > { %840 = vmatmul.mubr.bf16.vlgmr.msra.gmra.mrb[0].mxu0 %v1901_v17  ;;  %968 = vmatmul.mubr.bf16.vlgmr.msra.gmra.mrb[0].mxu1 %v1904_v18 }
  0x30   : > { %1683 = vmatprep.mubr.msk.bf16.mxu0 %vm703_vm0, %v1907_v19  ;;  %1699 = vmatprep.mubr.msk.bf16.mxu1 %vm703_vm0, %v1909_v20 }
  0x37   : > { %848 = vmatmul.mubr.bf16.gmra.mrb[4].mxu0 %v1911_v21  ;;  %976 = vmatmul.mubr.bf16.gmra.mrb[4].mxu1 %v1912_v22 }
  0x38   : > { %1684 = vmatprep.mubr.msk.bf16.mxu0 %vm703_vm0, %v1913_v23  ;;  %1700 = vmatprep.mubr.msk.bf16.mxu1 %vm703_vm0, %v1915_v24 }
  0x3f   : > { %856 = vmatmul.mubr.bf16.gmra.mrb[8].mxu0 %v1917_v25  ;;  %984 = vmatmul.mubr.bf16.gmra.mrb[8].mxu1 %v1918_v26 }
  0x40   : > { %1685 = vmatprep.mubr.msk.bf16.mxu0 %vm703_vm0, %v1919_v27  ;;  %1701 = vmatprep.mubr.msk.bf16.mxu1 %vm703_vm0, %v1921_v28 }
  0x47   : > { %864 = vmatmul.mubr.bf16.gmra.mrb[12].mxu0 %v1923_v29  ;;  %992 = vmatmul.mubr.bf16.gmra.mrb[12].mxu1 %v1924_v30 }
  0x48   : > { %1686 = vmatprep.mubr.msk.bf16.mxu0 %vm703_vm0, %v1925_v31  ;;  %1702 = vmatprep.mubr.msk.bf16.mxu1 %vm703_vm0, %v1927_v32 }
  0x4f   : > { %872 = vmatmul.mubr.bf16.gmra.mrb[16].mxu0 %v1929_v33  ;;  %1000 = vmatmul.mubr.bf16.gmra.mrb[16].mxu1 %v1930_v34 }
  0x50   : > { %1687 = vmatprep.mubr.msk.bf16.mxu0 %vm703_vm0, %v1931_v35  ;;  %1703 = vmatprep.mubr.msk.bf16.mxu1 %vm703_vm0, %v1933_v36 }
  0x57   : > { %880 = vmatmul.mubr.bf16.gmra.mrb[20].mxu0 %v1935_v37  ;;  %1008 = vmatmul.mubr.bf16.gmra.mrb[20].mxu1 %v1936_v38 }
  0x58   : > { %1688 = vmatprep.mubr.msk.bf16.mxu0 %vm703_vm0, %v1937_v39  ;;  %1704 = vmatprep.mubr.msk.bf16.mxu1 %vm703_vm0, %v1939_v40 }
  0x5f   : > { %888 = vmatmul.mubr.bf16.gmra.mrb[24].mxu0 %v1941_v41  ;;  %1016 = vmatmul.mubr.bf16.gmra.mrb[24].mxu1 %v1942_v42 }
  0x60   : > { %1689 = vmatprep.mubr.msk.bf16.mxu0 %vm703_vm0, %v1943_v43  ;;  %1705 = vmatprep.mubr.msk.bf16.mxu1 %vm703_vm0, %v1945_v44 }
  0x67   : > { %896 = vmatmul.mubr.bf16.gmra.mrb[28].mxu0 %v1947_v45  ;;  %1024 = vmatmul.mubr.bf16.gmra.mrb[28].mxu1 %v1948_v46 }
  0x68   : > { %1690 = vmatprep.mubr.msk.bf16.mxu0 %vm703_vm0, %v1949_v47  ;;  %1706 = vmatprep.mubr.msk.bf16.mxu1 %vm703_vm0, %v1951_v48 }
  0x6f   : > { %904 = vmatmul.mubr.bf16.gmra.mrb[32].mxu0 %v1953_v49  ;;  %1032 = vmatmul.mubr.bf16.gmra.mrb[32].mxu1 %v1954_v50 }
  0x70   : > { %1691 = vmatprep.mubr.msk.bf16.mxu0 %vm703_vm0, %v1955_v51  ;;  %1707 = vmatprep.mubr.msk.bf16.mxu1 %vm703_vm0, %v1957_v52 }
  0x77   : > { %912 = vmatmul.mubr.bf16.gmra.mrb[36].mxu0 %v1959_v53  ;;  %1040 = vmatmul.mubr.bf16.gmra.mrb[36].mxu1 %v1960_v54 }
  0x78   : > { %1692 = vmatprep.mubr.msk.bf16.mxu0 %vm703_vm0, %v1961_v55  ;;  %1708 = vmatprep.mubr.msk.bf16.mxu1 %vm703_vm0, %v1963_v56 }
  0x7f   : > { %920 = vmatmul.mubr.bf16.gmra.mrb[40].mxu0 %v1965_v57  ;;  %1048 = vmatmul.mubr.bf16.gmra.mrb[40].mxu1 %v1966_v58 }
  0x80   : > { %1693 = vmatprep.mubr.msk.bf16.mxu0 %vm703_vm0, %v1967_v59  ;;  %1709 = vmatprep.mubr.msk.bf16.mxu1 %vm703_vm0, %v1969_v60 }
  0x87   : > { %928 = vmatmul.mubr.bf16.gmra.mrb[44].mxu0 %v1971_v61  ;;  %1056 = vmatmul.mubr.bf16.gmra.mrb[44].mxu1 %v1972_v62 }
  0x88   : > { %1694 = vmatprep.mubr.msk.bf16.mxu0 %vm703_vm0, %v1973_v63  ;;  %1710 = vmatprep.mubr.msk.bf16.mxu1 %vm703_vm0, %v1975_v0 }
  0x8f   : > { %936 = vmatmul.mubr.bf16.gmra.mrb[48].mxu0 %v1977_v1  ;;  %1064 = vmatmul.mubr.bf16.gmra.mrb[48].mxu1 %v1978_v2 }
  0x90   : > { %1695 = vmatprep.mubr.msk.bf16.mxu0 %vm703_vm0, %v1979_v3  ;;  %1711 = vmatprep.mubr.msk.bf16.mxu1 %vm703_vm0, %v1981_v4 }
  0x97   : > { %944 = vmatmul.mubr.bf16.gmra.mrb[52].mxu0 %v1983_v5  ;;  %1072 = vmatmul.mubr.bf16.gmra.mrb[52].mxu1 %v1984_v6 }
  0x98   : > { %1696 = vmatprep.mubr.msk.bf16.mxu0 %vm703_vm0, %v1985_v7  ;;  %1712 = vmatprep.mubr.msk.bf16.mxu1 %vm703_vm0, %v1987_v8 }
  0x9f   : > { %952 = vmatmul.mubr.bf16.gmra.mrb[56].mxu0 %v1989_v9  ;;  %1080 = vmatmul.mubr.bf16.gmra.mrb[56].mxu1 %v1990_v10 }
  0xa0   : > { %1697 = vmatprep.mubr.msk.bf16.mxu0 %vm703_vm0, %v1991_v11  ;;  %1713 = vmatprep.mubr.msk.bf16.mxu1 %vm703_vm0, %v1993_v12 }
  0xa7   : > { %960 = vmatmul.mubr.bf16.gmra.mrb[60].mxu0 %v1995_v13  ;;  %1088 = vmatmul.mubr.bf16.gmra.mrb[60].mxu1 %v1996_v14 }
 0x102   : > { %v841_v16 = vpop.f32.mrb[0].mxu0  ;;  %v969_v17 = vpop.f32.mrb[0].mxu1 }
 0x103   : > { %v842_v18 = vadd.f32 %v2198_v15, %v841_v16  ;;  %v970_v19 = vadd.f32 %v2198_v15, %v969_v17  ;;  %v843_v20 = vpop.f32.mrb[1].mxu0  ;;  %v971_v21 = vpop.f32.mrb[1].mxu1 }
 0x104   : > { %v844_v22 = vpop.f32.mrb[2].mxu0  ;;  %v972_v23 = vpop.f32.mrb[2].mxu1 }
 0x105   : > { %v1096_v24 = vmax.f32 %v842_v18, 0.0  ;;  %v1128_v25 = vmax.f32 %v970_v19, 0.0  ;;  %v845_v26 = vadd.f32 %v2198_v15, %v844_v22  ;;  %v973_v27 = vadd.f32 %v2198_v15, %v972_v23  ;;  %v846_v28 = vpop.f32.mrb[3].mxu0  ;;  %v974_v29 = vpop.f32.mrb[3].mxu1 }
 0x107   : > { %v1781_v30 = vpack.c.bf16 %v1096_v24, %v1096_v24  ;;  %v1813_v31 = vpack.c.bf16 %v1128_v25, %v1128_v25  ;;  %v1097_v32 = vmax.f32 %v845_v26, 0.0  ;;  %v1129_v33 = vmax.f32 %v973_v27, 0.0 }
 0x109   : > { %1417 = vst.msk [vmem:[%s2208_s22] sm:$0xf] %vm1416_vm3, %v1781_v30  ;;  %1449 = vst.msk [vmem:[%s2208_s22 + $0x80] sm:$0xf] %vm1416_vm3, %v1813_v31  ;;  %v1782_v34 = vpack.c.bf16 %v1097_v32, %v1097_v32  ;;  %v1814_v35 = vpack.c.bf16 %v1129_v33, %v1129_v33 }
 0x10a   : > { %v849_v36 = vpop.f32.mrb[4].mxu0  ;;  %v977_v37 = vpop.f32.mrb[4].mxu1 }
 0x10b   : > { %1418 = vst.msk [vmem:[%s2208_s22 + $0x4] sm:$0xf] %vm1416_vm3, %v1782_v34  ;;  %1450 = vst.msk [vmem:[%s2208_s22 + $0x84] sm:$0xf] %vm1416_vm3, %v1814_v35  ;;  %v850_v38 = vadd.f32 %v2198_v15, %v849_v36  ;;  %v978_v39 = vadd.f32 %v2198_v15, %v977_v37  ;;  %v851_v40 = vpop.f32.mrb[5].mxu0  ;;  %v979_v41 = vpop.f32.mrb[5].mxu1 }
 0x10c   : > { %v852_v42 = vpop.f32.mrb[6].mxu0  ;;  %v980_v43 = vpop.f32.mrb[6].mxu1 }
 0x10d   : > { %v1098_v44 = vmax.f32 %v850_v38, 0.0  ;;  %v1130_v45 = vmax.f32 %v978_v39, 0.0  ;;  %v853_v46 = vadd.f32 %v2198_v15, %v852_v42  ;;  %v981_v47 = vadd.f32 %v2198_v15, %v980_v43  ;;  %v854_v48 = vpop.f32.mrb[7].mxu0  ;;  %v982_v49 = vpop.f32.mrb[7].mxu1 }
 0x10f   : > { %v1783_v50 = vpack.c.bf16 %v1098_v44, %v1098_v44  ;;  %v1815_v51 = vpack.c.bf16 %v1130_v45, %v1130_v45  ;;  %v1099_v52 = vmax.f32 %v853_v46, 0.0  ;;  %v1131_v53 = vmax.f32 %v981_v47, 0.0 }
 0x111   : > { %1419 = vst.msk [vmem:[%s2208_s22 + $0x8] sm:$0xf] %vm1416_vm3, %v1783_v50  ;;  %1451 = vst.msk [vmem:[%s2208_s22 + $0x88] sm:$0xf] %vm1416_vm3, %v1815_v51  ;;  %v1784_v54 = vpack.c.bf16 %v1099_v52, %v1099_v52  ;;  %v1816_v55 = vpack.c.bf16 %v1131_v53, %v1131_v53 }
 0x112   : > { %v857_v56 = vpop.f32.mrb[8].mxu0  ;;  %v985_v57 = vpop.f32.mrb[8].mxu1 }
 0x113   : > { %1420 = vst.msk [vmem:[%s2208_s22 + $0xc] sm:$0xf] %vm1416_vm3, %v1784_v54  ;;  %1452 = vst.msk [vmem:[%s2208_s22 + $0x8c] sm:$0xf] %vm1416_vm3, %v1816_v55  ;;  %v858_v58 = vadd.f32 %v2198_v15, %v857_v56  ;;  %v986_v59 = vadd.f32 %v2198_v15, %v985_v57  ;;  %v859_v60 = vpop.f32.mrb[9].mxu0  ;;  %v987_v61 = vpop.f32.mrb[9].mxu1 }
 0x114   : > { %v860_v62 = vpop.f32.mrb[10].mxu0  ;;  %v988_v63 = vpop.f32.mrb[10].mxu1 }
 0x115   : > { %v1100_v0 = vmax.f32 %v858_v58, 0.0  ;;  %v1132_v1 = vmax.f32 %v986_v59, 0.0  ;;  %v861_v2 = vadd.f32 %v2198_v15, %v860_v62  ;;  %v989_v3 = vadd.f32 %v2198_v15, %v988_v63  ;;  %v862_v4 = vpop.f32.mrb[11].mxu0  ;;  %v990_v5 = vpop.f32.mrb[11].mxu1 }
 0x117   : > { %v1785_v6 = vpack.c.bf16 %v1100_v0, %v1100_v0  ;;  %v1817_v7 = vpack.c.bf16 %v1132_v1, %v1132_v1  ;;  %v1101_v8 = vmax.f32 %v861_v2, 0.0  ;;  %v1133_v9 = vmax.f32 %v989_v3, 0.0 }
 0x119   : > { %1421 = vst.msk [vmem:[%s2208_s22 + $0x10] sm:$0xf] %vm1416_vm3, %v1785_v6  ;;  %1453 = vst.msk [vmem:[%s2208_s22 + $0x90] sm:$0xf] %vm1416_vm3, %v1817_v7  ;;  %v1786_v10 = vpack.c.bf16 %v1101_v8, %v1101_v8  ;;  %v1818_v11 = vpack.c.bf16 %v1133_v9, %v1133_v9 }
 0x11a   : > { %v865_v12 = vpop.f32.mrb[12].mxu0  ;;  %v993_v13 = vpop.f32.mrb[12].mxu1 }
 0x11b   : > { %1422 = vst.msk [vmem:[%s2208_s22 + $0x14] sm:$0xf] %vm1416_vm3, %v1786_v10  ;;  %1454 = vst.msk [vmem:[%s2208_s22 + $0x94] sm:$0xf] %vm1416_vm3, %v1818_v11  ;;  %v866_v14 = vadd.f32 %v2198_v15, %v865_v12  ;;  %v994_v16 = vadd.f32 %v2198_v15, %v993_v13  ;;  %v867_v17 = vpop.f32.mrb[13].mxu0  ;;  %v995_v18 = vpop.f32.mrb[13].mxu1 }
 0x11c   : > { %v868_v19 = vpop.f32.mrb[14].mxu0  ;;  %v996_v20 = vpop.f32.mrb[14].mxu1 }
 0x11d   : > { %v1102_v21 = vmax.f32 %v866_v14, 0.0  ;;  %v1134_v22 = vmax.f32 %v994_v16, 0.0  ;;  %v869_v23 = vadd.f32 %v2198_v15, %v868_v19  ;;  %v997_v24 = vadd.f32 %v2198_v15, %v996_v20  ;;  %v870_v25 = vpop.f32.mrb[15].mxu0  ;;  %v998_v26 = vpop.f32.mrb[15].mxu1 }
 0x11f   : > { %v1787_v27 = vpack.c.bf16 %v1102_v21, %v1102_v21  ;;  %v1819_v28 = vpack.c.bf16 %v1134_v22, %v1134_v22  ;;  %v1103_v29 = vmax.f32 %v869_v23, 0.0  ;;  %v1135_v30 = vmax.f32 %v997_v24, 0.0 }
 0x121   : > { %1423 = vst.msk [vmem:[%s2208_s22 + $0x18] sm:$0xf] %vm1416_vm3, %v1787_v27  ;;  %1455 = vst.msk [vmem:[%s2208_s22 + $0x98] sm:$0xf] %vm1416_vm3, %v1819_v28  ;;  %v1788_v31 = vpack.c.bf16 %v1103_v29, %v1103_v29  ;;  %v1820_v32 = vpack.c.bf16 %v1135_v30, %v1135_v30 }
 0x122   : > { %v873_v33 = vpop.f32.mrb[16].mxu0  ;;  %v1001_v34 = vpop.f32.mrb[16].mxu1 }
 0x123   : > { %1424 = vst.msk [vmem:[%s2208_s22 + $0x1c] sm:$0xf] %vm1416_vm3, %v1788_v31  ;;  %1456 = vst.msk [vmem:[%s2208_s22 + $0x9c] sm:$0xf] %vm1416_vm3, %v1820_v32  ;;  %v874_v35 = vadd.f32 %v2198_v15, %v873_v33  ;;  %v1002_v36 = vadd.f32 %v2198_v15, %v1001_v34  ;;  %v875_v37 = vpop.f32.mrb[17].mxu0  ;;  %v1003_v38 = vpop.f32.mrb[17].mxu1 }
 0x124   : > { %v876_v39 = vpop.f32.mrb[18].mxu0  ;;  %v1004_v40 = vpop.f32.mrb[18].mxu1 }
 0x125   : > { %v1104_v41 = vmax.f32 %v874_v35, 0.0  ;;  %v1136_v42 = vmax.f32 %v1002_v36, 0.0  ;;  %v877_v43 = vadd.f32 %v2198_v15, %v876_v39  ;;  %v1005_v44 = vadd.f32 %v2198_v15, %v1004_v40  ;;  %v878_v45 = vpop.f32.mrb[19].mxu0  ;;  %v1006_v46 = vpop.f32.mrb[19].mxu1 }
 0x127   : > { %v1789_v47 = vpack.c.bf16 %v1104_v41, %v1104_v41  ;;  %v1821_v48 = vpack.c.bf16 %v1136_v42, %v1136_v42  ;;  %v1105_v49 = vmax.f32 %v877_v43, 0.0  ;;  %v1137_v50 = vmax.f32 %v1005_v44, 0.0 }
 0x129   : > { %1425 = vst.msk [vmem:[%s2208_s22 + $0x20] sm:$0xf] %vm1416_vm3, %v1789_v47  ;;  %1457 = vst.msk [vmem:[%s2208_s22 + $0xa0] sm:$0xf] %vm1416_vm3, %v1821_v48  ;;  %v1790_v51 = vpack.c.bf16 %v1105_v49, %v1105_v49  ;;  %v1822_v52 = vpack.c.bf16 %v1137_v50, %v1137_v50 }
 0x12a   : > { %v881_v53 = vpop.f32.mrb[20].mxu0  ;;  %v1009_v54 = vpop.f32.mrb[20].mxu1 }
 0x12b   : > { %1426 = vst.msk [vmem:[%s2208_s22 + $0x24] sm:$0xf] %vm1416_vm3, %v1790_v51  ;;  %1458 = vst.msk [vmem:[%s2208_s22 + $0xa4] sm:$0xf] %vm1416_vm3, %v1822_v52  ;;  %v882_v55 = vadd.f32 %v2198_v15, %v881_v53  ;;  %v1010_v56 = vadd.f32 %v2198_v15, %v1009_v54  ;;  %v883_v57 = vpop.f32.mrb[21].mxu0  ;;  %v1011_v58 = vpop.f32.mrb[21].mxu1 }
 0x12c   : > { %v884_v59 = vpop.f32.mrb[22].mxu0  ;;  %v1012_v60 = vpop.f32.mrb[22].mxu1 }
 0x12d   : > { %v1106_v61 = vmax.f32 %v882_v55, 0.0  ;;  %v1138_v62 = vmax.f32 %v1010_v56, 0.0  ;;  %v885_v63 = vadd.f32 %v2198_v15, %v884_v59  ;;  %v1013_v0 = vadd.f32 %v2198_v15, %v1012_v60  ;;  %v886_v1 = vpop.f32.mrb[23].mxu0  ;;  %v1014_v2 = vpop.f32.mrb[23].mxu1 }
 0x12f   : > { %v1791_v3 = vpack.c.bf16 %v1106_v61, %v1106_v61  ;;  %v1823_v4 = vpack.c.bf16 %v1138_v62, %v1138_v62  ;;  %v1107_v5 = vmax.f32 %v885_v63, 0.0  ;;  %v1139_v6 = vmax.f32 %v1013_v0, 0.0 }
 0x131   : > { %1427 = vst.msk [vmem:[%s2208_s22 + $0x28] sm:$0xf] %vm1416_vm3, %v1791_v3  ;;  %1459 = vst.msk [vmem:[%s2208_s22 + $0xa8] sm:$0xf] %vm1416_vm3, %v1823_v4  ;;  %v1792_v7 = vpack.c.bf16 %v1107_v5, %v1107_v5  ;;  %v1824_v8 = vpack.c.bf16 %v1139_v6, %v1139_v6 }
 0x132   : > { %v889_v9 = vpop.f32.mrb[24].mxu0  ;;  %v1017_v10 = vpop.f32.mrb[24].mxu1 }
 0x133   : > { %1428 = vst.msk [vmem:[%s2208_s22 + $0x2c] sm:$0xf] %vm1416_vm3, %v1792_v7  ;;  %1460 = vst.msk [vmem:[%s2208_s22 + $0xac] sm:$0xf] %vm1416_vm3, %v1824_v8  ;;  %v890_v11 = vadd.f32 %v2198_v15, %v889_v9  ;;  %v1018_v12 = vadd.f32 %v2198_v15, %v1017_v10  ;;  %v891_v13 = vpop.f32.mrb[25].mxu0  ;;  %v1019_v14 = vpop.f32.mrb[25].mxu1 }
 0x134   : > { %v892_v16 = vpop.f32.mrb[26].mxu0  ;;  %v1020_v17 = vpop.f32.mrb[26].mxu1 }
 0x135   : > { %v1108_v18 = vmax.f32 %v890_v11, 0.0  ;;  %v1140_v19 = vmax.f32 %v1018_v12, 0.0  ;;  %v893_v20 = vadd.f32 %v2198_v15, %v892_v16  ;;  %v1021_v21 = vadd.f32 %v2198_v15, %v1020_v17  ;;  %v894_v22 = vpop.f32.mrb[27].mxu0  ;;  %v1022_v23 = vpop.f32.mrb[27].mxu1 }
 0x137   : > { %v1793_v24 = vpack.c.bf16 %v1108_v18, %v1108_v18  ;;  %v1825_v25 = vpack.c.bf16 %v1140_v19, %v1140_v19  ;;  %v1109_v26 = vmax.f32 %v893_v20, 0.0  ;;  %v1141_v27 = vmax.f32 %v1021_v21, 0.0 }
 0x139   : > { %1429 = vst.msk [vmem:[%s2208_s22 + $0x30] sm:$0xf] %vm1416_vm3, %v1793_v24  ;;  %1461 = vst.msk [vmem:[%s2208_s22 + $0xb0] sm:$0xf] %vm1416_vm3, %v1825_v25  ;;  %v1794_v28 = vpack.c.bf16 %v1109_v26, %v1109_v26  ;;  %v1826_v29 = vpack.c.bf16 %v1141_v27, %v1141_v27 }
 0x13a   : > { %v897_v30 = vpop.f32.mrb[28].mxu0  ;;  %v1025_v31 = vpop.f32.mrb[28].mxu1 }
 0x13b   : > { %1430 = vst.msk [vmem:[%s2208_s22 + $0x34] sm:$0xf] %vm1416_vm3, %v1794_v28  ;;  %1462 = vst.msk [vmem:[%s2208_s22 + $0xb4] sm:$0xf] %vm1416_vm3, %v1826_v29  ;;  %v898_v32 = vadd.f32 %v2198_v15, %v897_v30  ;;  %v1026_v33 = vadd.f32 %v2198_v15, %v1025_v31  ;;  %v899_v34 = vpop.f32.mrb[29].mxu0  ;;  %v1027_v35 = vpop.f32.mrb[29].mxu1 }
 0x13c   : > { %v900_v36 = vpop.f32.mrb[30].mxu0  ;;  %v1028_v37 = vpop.f32.mrb[30].mxu1 }
 0x13d   : > { %v1110_v38 = vmax.f32 %v898_v32, 0.0  ;;  %v1142_v39 = vmax.f32 %v1026_v33, 0.0  ;;  %v901_v40 = vadd.f32 %v2198_v15, %v900_v36  ;;  %v1029_v41 = vadd.f32 %v2198_v15, %v1028_v37  ;;  %v902_v42 = vpop.f32.mrb[31].mxu0  ;;  %v1030_v43 = vpop.f32.mrb[31].mxu1 }
 0x13f   : > { %v1795_v44 = vpack.c.bf16 %v1110_v38, %v1110_v38  ;;  %v1827_v45 = vpack.c.bf16 %v1142_v39, %v1142_v39  ;;  %v1111_v46 = vmax.f32 %v901_v40, 0.0  ;;  %v1143_v47 = vmax.f32 %v1029_v41, 0.0 }
 0x141   : > { %1431 = vst.msk [vmem:[%s2208_s22 + $0x38] sm:$0xf] %vm1416_vm3, %v1795_v44  ;;  %1463 = vst.msk [vmem:[%s2208_s22 + $0xb8] sm:$0xf] %vm1416_vm3, %v1827_v45  ;;  %v1796_v48 = vpack.c.bf16 %v1111_v46, %v1111_v46  ;;  %v1828_v49 = vpack.c.bf16 %v1143_v47, %v1143_v47 }
 0x142   : > { %v905_v50 = vpop.f32.mrb[32].mxu0  ;;  %v1033_v51 = vpop.f32.mrb[32].mxu1 }
 0x143   : > { %1432 = vst.msk [vmem:[%s2208_s22 + $0x3c] sm:$0xf] %vm1416_vm3, %v1796_v48  ;;  %1464 = vst.msk [vmem:[%s2208_s22 + $0xbc] sm:$0xf] %vm1416_vm3, %v1828_v49  ;;  %v906_v52 = vadd.f32 %v2198_v15, %v905_v50  ;;  %v1034_v53 = vadd.f32 %v2198_v15, %v1033_v51  ;;  %v907_v54 = vpop.f32.mrb[33].mxu0  ;;  %v1035_v55 = vpop.f32.mrb[33].mxu1 }
 0x144   : > { %v908_v56 = vpop.f32.mrb[34].mxu0  ;;  %v1036_v57 = vpop.f32.mrb[34].mxu1 }
 0x145   : > { %v1112_v58 = vmax.f32 %v906_v52, 0.0  ;;  %v1144_v59 = vmax.f32 %v1034_v53, 0.0  ;;  %v909_v60 = vadd.f32 %v2198_v15, %v908_v56  ;;  %v1037_v61 = vadd.f32 %v2198_v15, %v1036_v57  ;;  %v910_v62 = vpop.f32.mrb[35].mxu0  ;;  %v1038_v63 = vpop.f32.mrb[35].mxu1 }
 0x147   : > { %v1797_v0 = vpack.c.bf16 %v1112_v58, %v1112_v58  ;;  %v1829_v1 = vpack.c.bf16 %v1144_v59, %v1144_v59  ;;  %v1113_v2 = vmax.f32 %v909_v60, 0.0  ;;  %v1145_v3 = vmax.f32 %v1037_v61, 0.0 }
 0x149   : > { %1433 = vst.msk [vmem:[%s2208_s22 + $0x40] sm:$0xf] %vm1416_vm3, %v1797_v0  ;;  %1465 = vst.msk [vmem:[%s2208_s22 + $0xc0] sm:$0xf] %vm1416_vm3, %v1829_v1  ;;  %v1798_v4 = vpack.c.bf16 %v1113_v2, %v1113_v2  ;;  %v1830_v5 = vpack.c.bf16 %v1145_v3, %v1145_v3 }
 0x14a   : > { %v913_v6 = vpop.f32.mrb[36].mxu0  ;;  %v1041_v7 = vpop.f32.mrb[36].mxu1 }
 0x14b   : > { %1434 = vst.msk [vmem:[%s2208_s22 + $0x44] sm:$0xf] %vm1416_vm3, %v1798_v4  ;;  %1466 = vst.msk [vmem:[%s2208_s22 + $0xc4] sm:$0xf] %vm1416_vm3, %v1830_v5  ;;  %v914_v8 = vadd.f32 %v2198_v15, %v913_v6  ;;  %v1042_v9 = vadd.f32 %v2198_v15, %v1041_v7  ;;  %v915_v10 = vpop.f32.mrb[37].mxu0  ;;  %v1043_v11 = vpop.f32.mrb[37].mxu1 }
 0x14c   : > { %v916_v12 = vpop.f32.mrb[38].mxu0  ;;  %v1044_v13 = vpop.f32.mrb[38].mxu1 }
 0x14d   : > { %v1114_v14 = vmax.f32 %v914_v8, 0.0  ;;  %v1146_v16 = vmax.f32 %v1042_v9, 0.0  ;;  %v917_v17 = vadd.f32 %v2198_v15, %v916_v12  ;;  %v1045_v18 = vadd.f32 %v2198_v15, %v1044_v13  ;;  %v918_v19 = vpop.f32.mrb[39].mxu0  ;;  %v1046_v20 = vpop.f32.mrb[39].mxu1 }
 0x14f   : > { %v1799_v21 = vpack.c.bf16 %v1114_v14, %v1114_v14  ;;  %v1831_v22 = vpack.c.bf16 %v1146_v16, %v1146_v16  ;;  %v1115_v23 = vmax.f32 %v917_v17, 0.0  ;;  %v1147_v24 = vmax.f32 %v1045_v18, 0.0 }
 0x151   : > { %1435 = vst.msk [vmem:[%s2208_s22 + $0x48] sm:$0xf] %vm1416_vm3, %v1799_v21  ;;  %1467 = vst.msk [vmem:[%s2208_s22 + $0xc8] sm:$0xf] %vm1416_vm3, %v1831_v22  ;;  %v1800_v25 = vpack.c.bf16 %v1115_v23, %v1115_v23  ;;  %v1832_v26 = vpack.c.bf16 %v1147_v24, %v1147_v24 }
 0x152   : > { %v921_v27 = vpop.f32.mrb[40].mxu0  ;;  %v1049_v28 = vpop.f32.mrb[40].mxu1 }
 0x153   : > { %1436 = vst.msk [vmem:[%s2208_s22 + $0x4c] sm:$0xf] %vm1416_vm3, %v1800_v25  ;;  %1468 = vst.msk [vmem:[%s2208_s22 + $0xcc] sm:$0xf] %vm1416_vm3, %v1832_v26  ;;  %v922_v29 = vadd.f32 %v2198_v15, %v921_v27  ;;  %v1050_v30 = vadd.f32 %v2198_v15, %v1049_v28  ;;  %v923_v31 = vpop.f32.mrb[41].mxu0  ;;  %v1051_v32 = vpop.f32.mrb[41].mxu1 }
 0x154   : > { %v924_v33 = vpop.f32.mrb[42].mxu0  ;;  %v1052_v34 = vpop.f32.mrb[42].mxu1 }
 0x155   : > { %v1116_v35 = vmax.f32 %v922_v29, 0.0  ;;  %v1148_v36 = vmax.f32 %v1050_v30, 0.0  ;;  %v925_v37 = vadd.f32 %v2198_v15, %v924_v33  ;;  %v1053_v38 = vadd.f32 %v2198_v15, %v1052_v34  ;;  %v926_v39 = vpop.f32.mrb[43].mxu0  ;;  %v1054_v40 = vpop.f32.mrb[43].mxu1 }
 0x157   : > { %v1801_v41 = vpack.c.bf16 %v1116_v35, %v1116_v35  ;;  %v1833_v42 = vpack.c.bf16 %v1148_v36, %v1148_v36  ;;  %v1117_v43 = vmax.f32 %v925_v37, 0.0  ;;  %v1149_v44 = vmax.f32 %v1053_v38, 0.0 }
 0x159   : > { %1437 = vst.msk [vmem:[%s2208_s22 + $0x50] sm:$0xf] %vm1416_vm3, %v1801_v41  ;;  %1469 = vst.msk [vmem:[%s2208_s22 + $0xd0] sm:$0xf] %vm1416_vm3, %v1833_v42  ;;  %v1802_v45 = vpack.c.bf16 %v1117_v43, %v1117_v43  ;;  %v1834_v46 = vpack.c.bf16 %v1149_v44, %v1149_v44 }
 0x15a   : > { %v929_v47 = vpop.f32.mrb[44].mxu0  ;;  %v1057_v48 = vpop.f32.mrb[44].mxu1 }
 0x15b   : > { %1438 = vst.msk [vmem:[%s2208_s22 + $0x54] sm:$0xf] %vm1416_vm3, %v1802_v45  ;;  %1470 = vst.msk [vmem:[%s2208_s22 + $0xd4] sm:$0xf] %vm1416_vm3, %v1834_v46  ;;  %v930_v49 = vadd.f32 %v2198_v15, %v929_v47  ;;  %v1058_v50 = vadd.f32 %v2198_v15, %v1057_v48  ;;  %v931_v51 = vpop.f32.mrb[45].mxu0  ;;  %v1059_v52 = vpop.f32.mrb[45].mxu1 }
 0x15c   : > { %v932_v53 = vpop.f32.mrb[46].mxu0  ;;  %v1060_v54 = vpop.f32.mrb[46].mxu1 }
 0x15d   : > { %v1118_v55 = vmax.f32 %v930_v49, 0.0  ;;  %v1150_v56 = vmax.f32 %v1058_v50, 0.0  ;;  %v933_v57 = vadd.f32 %v2198_v15, %v932_v53  ;;  %v1061_v58 = vadd.f32 %v2198_v15, %v1060_v54  ;;  %v934_v59 = vpop.f32.mrb[47].mxu0  ;;  %v1062_v60 = vpop.f32.mrb[47].mxu1 }
 0x15f   : > { %v1803_v61 = vpack.c.bf16 %v1118_v55, %v1118_v55  ;;  %v1835_v62 = vpack.c.bf16 %v1150_v56, %v1150_v56  ;;  %v1119_v63 = vmax.f32 %v933_v57, 0.0  ;;  %v1151_v0 = vmax.f32 %v1061_v58, 0.0 }
 0x161   : > { %1439 = vst.msk [vmem:[%s2208_s22 + $0x58] sm:$0xf] %vm1416_vm3, %v1803_v61  ;;  %1471 = vst.msk [vmem:[%s2208_s22 + $0xd8] sm:$0xf] %vm1416_vm3, %v1835_v62  ;;  %v1804_v1 = vpack.c.bf16 %v1119_v63, %v1119_v63  ;;  %v1836_v2 = vpack.c.bf16 %v1151_v0, %v1151_v0 }
 0x162   : > { %v937_v3 = vpop.f32.mrb[48].mxu0  ;;  %v1065_v4 = vpop.f32.mrb[48].mxu1 }
 0x163   : > { %1440 = vst.msk [vmem:[%s2208_s22 + $0x5c] sm:$0xf] %vm1416_vm3, %v1804_v1  ;;  %1472 = vst.msk [vmem:[%s2208_s22 + $0xdc] sm:$0xf] %vm1416_vm3, %v1836_v2  ;;  %v938_v5 = vadd.f32 %v2198_v15, %v937_v3  ;;  %v1066_v6 = vadd.f32 %v2198_v15, %v1065_v4  ;;  %v939_v7 = vpop.f32.mrb[49].mxu0  ;;  %v1067_v8 = vpop.f32.mrb[49].mxu1 }
 0x164   : > { %v940_v9 = vpop.f32.mrb[50].mxu0  ;;  %v1068_v10 = vpop.f32.mrb[50].mxu1 }
 0x165   : > { %v1120_v11 = vmax.f32 %v938_v5, 0.0  ;;  %v1152_v12 = vmax.f32 %v1066_v6, 0.0  ;;  %v941_v13 = vadd.f32 %v2198_v15, %v940_v9  ;;  %v1069_v14 = vadd.f32 %v2198_v15, %v1068_v10  ;;  %v942_v16 = vpop.f32.mrb[51].mxu0  ;;  %v1070_v17 = vpop.f32.mrb[51].mxu1 }
 0x167   : > { %v1805_v18 = vpack.c.bf16 %v1120_v11, %v1120_v11  ;;  %v1837_v19 = vpack.c.bf16 %v1152_v12, %v1152_v12  ;;  %v1121_v20 = vmax.f32 %v941_v13, 0.0  ;;  %v1153_v21 = vmax.f32 %v1069_v14, 0.0 }
 0x169   : > { %1441 = vst.msk [vmem:[%s2208_s22 + $0x60] sm:$0xf] %vm1416_vm3, %v1805_v18  ;;  %1473 = vst.msk [vmem:[%s2208_s22 + $0xe0] sm:$0xf] %vm1416_vm3, %v1837_v19  ;;  %v1806_v22 = vpack.c.bf16 %v1121_v20, %v1121_v20  ;;  %v1838_v23 = vpack.c.bf16 %v1153_v21, %v1153_v21 }
 0x16a   : > { %v945_v24 = vpop.f32.mrb[52].mxu0  ;;  %v1073_v25 = vpop.f32.mrb[52].mxu1 }
 0x16b   : > { %1442 = vst.msk [vmem:[%s2208_s22 + $0x64] sm:$0xf] %vm1416_vm3, %v1806_v22  ;;  %1474 = vst.msk [vmem:[%s2208_s22 + $0xe4] sm:$0xf] %vm1416_vm3, %v1838_v23  ;;  %v946_v26 = vadd.f32 %v2198_v15, %v945_v24  ;;  %v1074_v27 = vadd.f32 %v2198_v15, %v1073_v25  ;;  %v947_v28 = vpop.f32.mrb[53].mxu0  ;;  %v1075_v29 = vpop.f32.mrb[53].mxu1 }
 0x16c   : > { %v948_v30 = vpop.f32.mrb[54].mxu0  ;;  %v1076_v31 = vpop.f32.mrb[54].mxu1 }
 0x16d   : > { %v1122_v32 = vmax.f32 %v946_v26, 0.0  ;;  %v1154_v33 = vmax.f32 %v1074_v27, 0.0  ;;  %v949_v34 = vadd.f32 %v2198_v15, %v948_v30  ;;  %v1077_v35 = vadd.f32 %v2198_v15, %v1076_v31  ;;  %v950_v36 = vpop.f32.mrb[55].mxu0  ;;  %v1078_v37 = vpop.f32.mrb[55].mxu1 }
 0x16f   : > { %v1807_v38 = vpack.c.bf16 %v1122_v32, %v1122_v32  ;;  %v1839_v39 = vpack.c.bf16 %v1154_v33, %v1154_v33  ;;  %v1123_v40 = vmax.f32 %v949_v34, 0.0  ;;  %v1155_v41 = vmax.f32 %v1077_v35, 0.0 }
 0x171   : > { %1443 = vst.msk [vmem:[%s2208_s22 + $0x68] sm:$0xf] %vm1416_vm3, %v1807_v38  ;;  %1475 = vst.msk [vmem:[%s2208_s22 + $0xe8] sm:$0xf] %vm1416_vm3, %v1839_v39  ;;  %v1808_v42 = vpack.c.bf16 %v1123_v40, %v1123_v40  ;;  %v1840_v43 = vpack.c.bf16 %v1155_v41, %v1155_v41 }
 0x172   : > { %v953_v44 = vpop.f32.mrb[56].mxu0  ;;  %v1081_v45 = vpop.f32.mrb[56].mxu1 }
 0x173   : > { %1444 = vst.msk [vmem:[%s2208_s22 + $0x6c] sm:$0xf] %vm1416_vm3, %v1808_v42  ;;  %1476 = vst.msk [vmem:[%s2208_s22 + $0xec] sm:$0xf] %vm1416_vm3, %v1840_v43  ;;  %v954_v46 = vadd.f32 %v2198_v15, %v953_v44  ;;  %v1082_v47 = vadd.f32 %v2198_v15, %v1081_v45  ;;  %v955_v48 = vpop.f32.mrb[57].mxu0  ;;  %v1083_v49 = vpop.f32.mrb[57].mxu1 }
 0x174   : > { %v956_v50 = vpop.f32.mrb[58].mxu0  ;;  %v1084_v51 = vpop.f32.mrb[58].mxu1 }
 0x175   : > { %v1124_v52 = vmax.f32 %v954_v46, 0.0  ;;  %v1156_v53 = vmax.f32 %v1082_v47, 0.0  ;;  %v957_v54 = vadd.f32 %v2198_v15, %v956_v50  ;;  %v1085_v55 = vadd.f32 %v2198_v15, %v1084_v51  ;;  %v958_v56 = vpop.f32.mrb[59].mxu0  ;;  %v1086_v57 = vpop.f32.mrb[59].mxu1 }
 0x177   : > { %v1809_v58 = vpack.c.bf16 %v1124_v52, %v1124_v52  ;;  %v1841_v59 = vpack.c.bf16 %v1156_v53, %v1156_v53  ;;  %v1125_v60 = vmax.f32 %v957_v54, 0.0  ;;  %v1157_v61 = vmax.f32 %v1085_v55, 0.0 }
 0x179   : > { %1445 = vst.msk [vmem:[%s2208_s22 + $0x70] sm:$0xf] %vm1416_vm3, %v1809_v58  ;;  %1477 = vst.msk [vmem:[%s2208_s22 + $0xf0] sm:$0xf] %vm1416_vm3, %v1841_v59  ;;  %v1810_v62 = vpack.c.bf16 %v1125_v60, %v1125_v60  ;;  %v1842_v63 = vpack.c.bf16 %v1157_v61, %v1157_v61 }
 0x17a   : > { %v961_v0 = vpop.f32.mrb[60].mxu0  ;;  %v1089_v1 = vpop.f32.mrb[60].mxu1 }
 0x17b   : > { %1446 = vst.msk [vmem:[%s2208_s22 + $0x74] sm:$0xf] %vm1416_vm3, %v1810_v62  ;;  %1478 = vst.msk [vmem:[%s2208_s22 + $0xf4] sm:$0xf] %vm1416_vm3, %v1842_v63  ;;  %v962_v2 = vadd.f32 %v2198_v15, %v961_v0  ;;  %v1090_v3 = vadd.f32 %v2198_v15, %v1089_v1  ;;  %v963_v4 = vpop.f32.mrb[61].mxu0  ;;  %v1091_v5 = vpop.f32.mrb[61].mxu1 }
 0x17c   : > { %v964_v6 = vpop.f32.mrb[62].mxu0  ;;  %v1092_v7 = vpop.f32.mrb[62].mxu1 }
 0x17d   : > { %v1126_v8 = vmax.f32 %v962_v2, 0.0  ;;  %v1158_v9 = vmax.f32 %v1090_v3, 0.0  ;;  %v965_v10 = vadd.f32 %v2198_v15, %v964_v6  ;;  %v1093_v11 = vadd.f32 %v2198_v15, %v1092_v7  ;;  %v966_v12 = vpop.f32.mrb[63].mxu0  ;;  %v1094_v13 = vpop.f32.mrb[63].mxu1 }
 0x17f   : > { %v1811_v14 = vpack.c.bf16 %v1126_v8, %v1126_v8  ;;  %v1843_v16 = vpack.c.bf16 %v1158_v9, %v1158_v9  ;;  %v1127_v17 = vmax.f32 %v965_v10, 0.0  ;;  %v1159_v18 = vmax.f32 %v1093_v11, 0.0 }
 0x181   : > { %1447 = vst.msk [vmem:[%s2208_s22 + $0x78] sm:$0xf] %vm1416_vm3, %v1811_v14  ;;  %1479 = vst.msk [vmem:[%s2208_s22 + $0xf8] sm:$0xf] %vm1416_vm3, %v1843_v16  ;;  %v1812_v19 = vpack.c.bf16 %v1127_v17, %v1127_v17  ;;  %v1844_v20 = vpack.c.bf16 %v1159_v18, %v1159_v18 }
 0x183   : > { %1448 = vst.msk [vmem:[%s2208_s22 + $0x7c] sm:$0xf] %vm1416_vm3, %v1812_v19  ;;  %1480 = vst.msk [vmem:[%s2208_s22 + $0xfc] sm:$0xf] %vm1416_vm3, %v1844_v20 }
 0x184 PF: > { %s13_s14 = sadd.s32 1, %s2019_s14   ;;  %s2411_s12 = smov %s2015_s13 }
 0x185   : > { %p10_p5 = scmp.ge.s32.totalorder %s13_s14, 6   ;;  %s2412_s13 = smov %s2414_s15 }
 0x187   :  { %12 = sbr.rel (!%p10_p5) target bundleno = 2 (0x2), region = 68 }

</bundles_post_ra>
